<compile_context>
chip_gen: v7x
topology: tpu7x:2x2x1
jax: 0.10.0
libtpu: 0.0.40
codegen_flags: <defaults>
</compile_context>

<pallas_src>
import functools

import jax
import jax.numpy as jnp
from jax import lax
from jax.experimental import pallas as pl
from jax.experimental.pallas import tpu as pltpu


LANE = 128


def _round_up(n, m):
    return ((n + m - 1) // m) * m


# ---------------------------------------------------------------------------
# Fused Linear + (optional) softmax kernel
# ---------------------------------------------------------------------------
def _adaptive_gate_kernel(x_ref, w_ref, b_ref, o_ref, *, num_experts, normalize):
    # (B, D) @ (D, Ep) + (1, Ep) -> (B, Ep), f32 accumulation on the MXU.
    logits = (
        jnp.dot(x_ref[...], w_ref[...], preferred_element_type=jnp.float32)
        + b_ref[...]
    )
    e_pad = logits.shape[-1]
    if normalize:
        if num_experts < e_pad:
            # Mask padded expert columns so exp(.) == 0 and they do not
            # contribute to the softmax normalizer.
            col = lax.broadcasted_iota(jnp.int32, logits.shape, 1)
            logits = jnp.where(col < num_experts, logits, -1e30)
        m = jnp.max(logits, axis=-1, keepdims=True)
        e = jnp.exp(logits - m)
        s = jnp.sum(e, axis=-1, keepdims=True)
        out = e * pl.reciprocal(s, approx=False)
    else:
        out = logits
    o_ref[...] = out.astype(o_ref.dtype)


def adaptive_gate(x, w_pad, b_pad, *, num_experts, normalize=True):
    """x: (bs, input_size); w_pad: (input_size, Ep); b_pad: (1, Ep).

    Returns softmax(x @ W + b, axis=1) (or the raw logits if normalize=False),
    sliced back to (bs, num_experts).
    """
    assert x.ndim == 2, f"gate input must be (bs, input_size), got {x.shape}"
    B, D = x.shape
    Ep = w_pad.shape[1]
    out = pl.pallas_call(
        functools.partial(
            _adaptive_gate_kernel, num_experts=num_experts, normalize=normalize
        ),
        out_shape=jax.ShapeDtypeStruct((B, Ep), jnp.float32),
        grid_spec=pltpu.PrefetchScalarGridSpec(
            num_scalar_prefetch=0,
            grid=(1,),
            in_specs=[
                pl.BlockSpec((B, D), lambda i: (0, 0)),
                pl.BlockSpec((D, Ep), lambda i: (0, 0)),
                pl.BlockSpec((1, Ep), lambda i: (0, 0)),
            ],
            out_specs=pl.BlockSpec((B, Ep), lambda i: (0, 0)),
        ),
        compiler_params=pltpu.CompilerParams(
            dimension_semantics=("arbitrary",)
        ),
    )(x, w_pad, b_pad)
    return out[:, :num_experts]


# ---------------------------------------------------------------------------
# Parameter construction (PyTorch nn.Linear-style uniform init).
# Weights are stored transposed and lane-padded once, here, so the per-call
# path has no padding work.
# ---------------------------------------------------------------------------
def init_adaptive_gate_params(key, input_size, num_experts, *, bias=True):
    e_pad = max(LANE, _round_up(num_experts, LANE))
    bound = 1.0 / float(jnp.sqrt(jnp.float32(input_size)))
    kw, kb = jax.random.split(key)
    w = jax.random.uniform(
        kw, (input_size, num_experts), jnp.float32, -bound, bound
    )
    w_pad = jnp.zeros((input_size, e_pad), jnp.float32).at[:, :num_experts].set(w)
    if bias:
        b = jax.random.uniform(kb, (num_experts,), jnp.float32, -bound, bound)
    else:
        # AdaptiveGate(requires_grad=False) uses a bias-free Linear.
        b = jnp.zeros((num_experts,), jnp.float32)
    b_pad = jnp.zeros((1, e_pad), jnp.float32).at[:, :num_experts].set(b)
    return {"w": w, "b": b, "w_pad": w_pad, "b_pad": b_pad}


# TODO(synk): the optional custom `forward_function` override (non-Linear gate)
# is not translated; only the default nn.Linear gate path is implemented.


if __name__ == "__main__":
    # Small, module-consistent shapes: x is (batch, input_size).
    B, input_size, num_experts = 8, 32, 4

    key = jax.random.PRNGKey(0)
    kx, kp = jax.random.split(key)
    x = jax.random.normal(kx, (B, input_size), dtype=jnp.float32)
    params = init_adaptive_gate_params(kp, input_size, num_experts, bias=True)

    # normalize=True (default): softmax over experts.
    out = adaptive_gate(
        x, params["w_pad"], params["b_pad"],
        num_experts=num_experts, normalize=True,
    )
    jax.block_until_ready(out)
    assert out.shape == (B, num_experts)

    ref_logits = x @ params["w"] + params["b"][None, :]
    ref = jax.nn.softmax(ref_logits, axis=1)
    assert bool(jnp.allclose(out, ref, atol=2e-4, rtol=2e-4))
    assert bool(jnp.allclose(jnp.sum(out, axis=1), 1.0, atol=1e-4))

    # normalize=False: raw gate logits.
    out_raw = adaptive_gate(
        x, params["w_pad"], params["b_pad"],
        num_experts=num_experts, normalize=False,
    )
    jax.block_until_ready(out_raw)
    assert out_raw.shape == (B, num_experts)
    assert bool(jnp.allclose(out_raw, ref_logits, atol=2e-4, rtol=2e-4))

    print("KERNEL_OK")
</pallas_src>

<mosaic_0001>
module attributes {stable_mosaic.version = 11 : i64} {
  func.func @_adaptive_gate_kernel(%arg0: i32, %arg1: memref<8x32xf32, #tpu.memory_space<vmem>>, %arg2: memref<32x128xf32, #tpu.memory_space<vmem>>, %arg3: memref<1x128xf32, #tpu.memory_space<vmem>>, %arg4: memref<8x128xf32, #tpu.memory_space<vmem>>) attributes {dimension_semantics = [#tpu.dimension_semantics<arbitrary>], iteration_bounds = array<i64: 1>, scalar_prefetch = 0 : i64, scratch_operands = 0 : i64, tpu.core_type = #tpu.core_type<tc>, window_params = [{pipeline_mode = #tpu.pipeline_mode<synchronous>, transform_indices = @transform_0, window_bounds = array<i64: 8, 32>}, {pipeline_mode = #tpu.pipeline_mode<synchronous>, transform_indices = @transform_1, window_bounds = array<i64: 32, 128>}, {pipeline_mode = #tpu.pipeline_mode<synchronous>, transform_indices = @transform_2, window_bounds = array<i64: 1, 128>}, {pipeline_mode = #tpu.pipeline_mode<synchronous>, transform_indices = @transform_3, window_bounds = array<i64: 8, 128>}]} {
    %c0 = arith.constant 0 : index
    %c0_0 = arith.constant 0 : index
    %0 = vector.load %arg1[%c0, %c0_0] : memref<8x32xf32, #tpu.memory_space<vmem>>, vector<8x32xf32>
    %c0_1 = arith.constant 0 : index
    %c0_2 = arith.constant 0 : index
    %1 = vector.load %arg2[%c0_1, %c0_2] : memref<32x128xf32, #tpu.memory_space<vmem>>, vector<32x128xf32>
    %cst = arith.constant dense<0.000000e+00> : vector<8x128xf32>
    %2 = tpu.matmul %0, %1, %cst {dimension_numbers = #tpu.dot_dimension_numbers<[1], [0], [0], [1], [0, 0, 1, 1], [], []>} : vector<8x32xf32>, vector<32x128xf32>, vector<8x128xf32> -> vector<8x128xf32>
    %c0_3 = arith.constant 0 : index
    %c0_4 = arith.constant 0 : index
    %3 = vector.load %arg3[%c0_3, %c0_4] : memref<1x128xf32, #tpu.memory_space<vmem>>, vector<1x128xf32>
    %4 = vector.broadcast %3 : vector<1x128xf32> to vector<8x128xf32>
    %5 = arith.addf %2, %4 : vector<8x128xf32>
    %6 = tpu.iota {dimensions = array<i32: 1>} : vector<8x128xi32>
    %c4_i32 = arith.constant 4 : i32
    %7 = vector.broadcast %c4_i32 : i32 to vector<8x128xi32>
    %8 = arith.cmpi slt, %6, %7 : vector<8x128xi32>
    %cst_5 = arith.constant -1.000000e+30 : f32
    %9 = vector.broadcast %cst_5 : f32 to vector<8x128xf32>
    %10 = arith.select %8, %5, %9 : vector<8x128xi1>, vector<8x128xf32>
    %cst_6 = arith.constant dense<0xFF800000> : vector<8xf32>
    %11 = vector.multi_reduction <maximumf>, %10, %cst_6 [1] : vector<8x128xf32> to vector<8xf32>
    %12 = vector.shape_cast %11 : vector<8xf32> to vector<8x1xf32>
    %13 = vector.broadcast %12 : vector<8x1xf32> to vector<8x128xf32>
    %14 = arith.subf %10, %13 : vector<8x128xf32>
    %15 = math.exp %14 : vector<8x128xf32>
    %cst_7 = arith.constant dense<0.000000e+00> : vector<8xf32>
    %16 = vector.multi_reduction <add>, %15, %cst_7 [1] : vector<8x128xf32> to vector<8xf32>
    %17 = vector.shape_cast %16 : vector<8xf32> to vector<8x1xf32>
    %18 = tpu.reciprocal %17 : vector<8x1xf32> -> vector<8x1xf32>
    %19 = vector.broadcast %18 : vector<8x1xf32> to vector<8x128xf32>
    %20 = arith.mulf %15, %19 : vector<8x128xf32>
    %c0_8 = arith.constant 0 : index
    %c0_9 = arith.constant 0 : index
    %21 = vector.load %arg4[%c0_8, %c0_9] : memref<8x128xf32, #tpu.memory_space<vmem>>, vector<8x128xf32>
    tpu.vector_store %arg4[%c0_8, %c0_9], %20 {strides = array<i32>} : memref<8x128xf32, #tpu.memory_space<vmem>>, vector<8x128xf32>,
    return
  }
  func.func @transform_0(%arg0: i32) -> (i32, i32) {
    %c0_i32 = arith.constant 0 : i32
    %c0_i32_0 = arith.constant 0 : i32
    %c0_i32_1 = arith.constant 0 : i32
    return %c0_i32, %c0_i32_0 : i32, i32
  }
  func.func @transform_1(%arg0: i32) -> (i32, i32) {
    %c0_i32 = arith.constant 0 : i32
    %c0_i32_0 = arith.constant 0 : i32
    %c0_i32_1 = arith.constant 0 : i32
    return %c0_i32, %c0_i32_0 : i32, i32
  }
  func.func @transform_2(%arg0: i32) -> (i32, i32) {
    %c0_i32 = arith.constant 0 : i32
    %c0_i32_0 = arith.constant 0 : i32
    %c0_i32_1 = arith.constant 0 : i32
    return %c0_i32, %c0_i32_0 : i32, i32
  }
  func.func @transform_3(%arg0: i32) -> (i32, i32) {
    %c0_i32 = arith.constant 0 : i32
    %c0_i32_0 = arith.constant 0 : i32
    %c0_i32_1 = arith.constant 0 : i32
    return %c0_i32, %c0_i32_0 : i32, i32
  }
}

</mosaic_0001>

<bundles_post_ra>
// kernel: tpu_custom_call.1
= control target key start
LH: loop header
LB: loop body
LE: loop exit
PB: predicated region body
PF: predicated region fallthrough
CT: control target
= control target key end

     0   :  { %8 = vsyncpa [#allocation3], 0  ;;  %s339_s0 = inlined_call_operand.hbm [shape: f32[8,32], index: 0, kind: input, shape index: {}]   ;;  %s340_s1 = inlined_call_operand.hbm [shape: f32[32,128], index: 1, kind: input, shape index: {}]   ;;  %s341_s2 = inlined_call_operand.vmem [shape: f32[1,128], index: 2, kind: input, shape index: {}]   ;;  %s342_s3 = inlined_call_operand.hbm [shape: f32[8,128], index: 3, kind: output, shape index: {}]  }
   0x1   :  { %9 = vsyncpa [#allocation6], 0 }
   0x2   :  { %10 = vsyncpa [#allocation4], 0  ;;  %s265_s12 = smov [#allocation2]   ;;  %s266_s14 = smov [#allocation5]  }
   0x3   :  { %s17_s13 = sshll.u32 %s265_s12, 4  ;;  %s26_s15 = sshll.u32 %s266_s14, 4  ;;  %s18_s13 = int_to_ptr.vmem [resolvable:$true] %s17_s13  ;;  %s293_s15 = int_to_ptr.vmem [resolvable:$true] %s26_s15 }
   0x4   :  { %s193_s18 = scalar_lea.hbm %s339_s0, 128 }
   0x5   :  { %p194_p0 = scmp.ne.s32.totalorder %s339_s0, %s193_s18  ;;  %p197_p1 = scmp.lt.u32.totalorder %s193_s18, %s339_s0 }
   0x7   :  { %p199_p2 = pnand %p197_p1, %p194_p0 }
   0x9   :  { %202 = shalt.err (!%p199_p2)
}
   0xa   :  { %s203_s23 = scalar_lea.vmem %s18_s13, 128  ;;  %p208_p4 = scmp.lt.s32.totalorder %s18_s13, %s18_s13 }
   0xb   :  { %p204_p3 = scmp.ne.s32.totalorder %s18_s13, %s203_s23  ;;  %p209_p5 = scmp.lt.s32.totalorder %s203_s23, %s203_s23 }
   0xd   :  { %p210_p6 = por %p209_p5, %p208_p4 }
   0xf   :  { %p211_p7 = pnand %p210_p6, %p204_p3 }
  0x11   :  { %214 = shalt.err (!%p211_p7)
}
  0x12   :  { %20 = dma.hbm_to_vmem [thread:$0]  %s339_s0, 128, %s18_s13, [#allocation3]  }
  0x13   :  { %s215_s28 = scalar_lea.hbm %s340_s1, 512 }
  0x14   :  { %p216_p8 = scmp.ne.s32.totalorder %s340_s1, %s215_s28  ;;  %p219_p9 = scmp.lt.u32.totalorder %s215_s28, %s340_s1 }
  0x16   :  { %p221_p10 = pnand %p219_p9, %p216_p8 }
  0x18   :  { %224 = shalt.err (!%p221_p10)
}
  0x19   :  { %s225_s6 = scalar_lea.vmem %s293_s15, 512  ;;  %p230_p12 = scmp.lt.s32.totalorder %s293_s15, %s293_s15 }
  0x1a   :  { %p226_p11 = scmp.ne.s32.totalorder %s293_s15, %s225_s6  ;;  %p231_p13 = scmp.lt.s32.totalorder %s225_s6, %s225_s6 }
  0x1c   :  { %p232_p0 = por %p231_p13, %p230_p12 }
  0x1e   :  { %p233_p1 = pnand %p232_p0, %p226_p11 }
  0x20   :  { %236 = shalt.err (!%p233_p1)
}
  0x21   :  { %s267_s0 = smov 128   ;;  %s268_s7 = smov 8  }
  0x22   :  { %32 = dma.hbm_to_vmem [thread:$0]  %s340_s1, 512, %s293_s15, [#allocation6], %s267_s0, %s267_s0, %s268_s7  }
  0x23   :  { %259 = dma.done.wait [#allocation3], 128  }
  0x24   :  { %260 = vsyncadd [#allocation3], 4294967168 }
  0x25   :  { %261 = dma.done.wait [#allocation6], 512  }
  0x26   :  { %262 = vsyncadd [#allocation6], 4294966784  ;;  %v269_v0 = vmov 0.0|0.0   ;;  %vm270_vm0 = vmmov 0   ;;  %v271_v1 = vmov 0.0   ;;  %v42_v2 = vld [vmem:[#allocation5] sm:$0xff]  ;;  %v127_v9 = vlaneseq }
  0x27   :  { %175 = vmatprep.subr.bf16.mxu0 %v269_v0  ;;  %172 = vmatprep.mubr.msk.f32.mxu0 %vm270_vm0, %v271_v1  ;;  %v43_v3 = vld [vmem:[#allocation5 + $0x8] sm:$0xff]  ;;  %v44_v4 = vld [vmem:[#allocation5 + $0x10] sm:$0xff]  ;;  %v45_v6 = vld [vmem:[#allocation5 + $0x18] sm:$0xff]  ;;  %vm53_vm1 = vcmask 261120   ;;  %s272_s11 = smov [#allocation7]  }
  0x28   :  { %v176_v5 = vpack.c.bf16 %v43_v3, %v42_v2  ;;  %v179_v7 = vpack.c.bf16 %v45_v6, %v44_v4  ;;  %v41_v8 = vld [vmem:[#allocation2] sm:$0xff]  ;;  %v128_v10 = vand.u32 127, %v127_v9  ;;  %s147_s12 = sshll.u32 %s272_s11, 4  ;;  %s148_s12 = int_to_ptr.vmem [resolvable:$true] %s147_s12 }
  0x29   :  { %v157_v11 = vld [vmem:[%s341_s2] ss:$0 sm:$0xff]  ;;  %s237_s2 = scalar_lea.vmem %s148_s12, 128  ;;  %p242_p3 = scmp.lt.s32.totalorder %s148_s12, %s148_s12 }
  0x2a   :  { %177 = vmatpush3.bf16.msra.mxu0 %v176_v5  ;;  %vm129_vm2 = vcmp.lt.s32.totalorder %v128_v10, 4  ;;  %p238_p2 = scmp.ne.s32.totalorder %s148_s12, %s237_s2  ;;  %p243_p4 = scmp.lt.s32.totalorder %s237_s2, %s237_s2 }
  0x2b   :  { %178 = vmatprep.subr.bf16.mxu0 %v269_v0 }
  0x2c   :  { %p244_p5 = por %p243_p4, %p242_p3 }
  0x2e   :  { %180 = vmatpush3.bf16.msra.mxu0 %v179_v7  ;;  %p245_p6 = pnand %p244_p5, %p238_p2 }
  0x31   :  { %173 = vmatmul.mubr.msk.f32.vlgmr.msra.gmra.mrb[0].mxu0 %vm53_vm1, %v41_v8 }
 0x104   :  { %v123_v12 = vpop.f32.mrb[0].mxu0 }
 0x105   :  { %v124_v13 = vadd.f32 %v157_v11, %v123_v12  ;;  %v174_v14 = vpop.f32.mrb[1].mxu0 }
 0x107   :  { %v130_v15 = vsel %vm129_vm2, %v124_v13, -1e+30 }
 0x108   :  { %131 = vmax.xlane.f32.xlu0 %v130_v15 }
 0x195   :  { %v132_v16 = vpop.xlane.xlu0 %131 }
 0x196   :  { %v133_v17 = vsub.f32 %v130_v15, %v132_v16 }
 0x198   :  { %v134_v18 = vmul.f32 1.442695, %v133_v17 }
 0x19a   :  { %189 = vpow2.f32 %v134_v18 }
 0x1a4   :  { %v190_v19 = vpop.eup %189 }
 0x1a5   :  { %136 = vadd.xlane.f32.xlu0 %v190_v19 }
 0x232   :  { %v137_v20 = vpop.xlane.xlu0 %136 }
 0x233   :  { %191 = vrcp.f32 %v137_v20 }
 0x23d   :  { %v192_v21 = vpop.eup %191 }
 0x23e   :  { %v139_v22 = vmul.f32 %v192_v21, %v190_v19 }
 0x240   :  { %140 = vst [vmem:[#allocation7] sm:$0xff] %v139_v22 }
 0x241   :  { %248 = shalt.err (!%p245_p6)
}
 0x242   :  { %s249_s15 = scalar_lea.hbm %s342_s3, 128 }
 0x243   :  { %p250_p7 = scmp.ne.s32.totalorder %s342_s3, %s249_s15  ;;  %p253_p8 = scmp.lt.u32.totalorder %s249_s15, %s342_s3 }
 0x245   :  { %p255_p9 = pnand %p253_p8, %p250_p7 }
 0x247   :  { %258 = shalt.err (!%p255_p9)
}
 0x248   :  { %150 = dma.vmem_to_hbm [thread:$0]  %s148_s12, 128, %s342_s3, [#allocation4]  }
 0x249   :  { %263 = dma.done.wait [#allocation4], 128  }
 0x24a   :  { %264 = vsyncadd [#allocation4], 4294967168 }
 0x24b   :  { %154 = vsyncpa [#allocation3], 1 }
 0x24c   :  { %155 = vsyncpa [#allocation6], 1 }
 0x24d   :  { %156 = vsyncpa [#allocation4], 1 }

</bundles_post_ra>
